<compile_context>
chip_gen: v6e
topology: v6e:2x2x1
jax: 0.10.0
libtpu: 0.0.40
codegen_flags: <defaults>
</compile_context>

<pallas_src>
import jax
import jax.numpy as jnp
from jax.experimental import pallas as pl
from jax.experimental.pallas import tpu as pltpu

_LANES = 128                         # vreg lane width
_SUB = 16                            # sublane multiple (covers bf16 packing and f32)
_VMEM_TILE_BUDGET = 20 * 1024 * 1024  # per-step tiles + resident weight (v7x-safe)


def _round_up(x, m):
    return (x + m - 1) // m * m


def _cdiv(a, b):
    return (a + b - 1) // b


def _matmul_bias_kernel(lhs_ref, w_ref, b_ref, o_ref):
    # lhs_ref: (TM, GKc_p)   packed im2col rows (compute dtype, e.g. bf16)
    # w_ref:   (GKc_p, NL)   block-diagonal fused conv weight (VMEM-resident)
    # b_ref:   (1, NL)       packed bias, f32
    # o_ref:   (TM, NL)      packed, lane-dense output tile (no zero channels)
    acc = jnp.dot(lhs_ref[...], w_ref[...], preferred_element_type=jnp.float32)
    o_ref[...] = (acc + b_ref[...]).astype(o_ref.dtype)


def deformable_conv2d(x_nchw, weight_oihw, bias, padding, *,
                      tm=2048, compute_dtype=jnp.bfloat16):
    """Equivalent of DeformableConv2d.forward(x) == Conv2d(x) with bias."""
    N, Cin, H, W = x_nchw.shape
    Cout, Cin_w, K, K2 = weight_oihw.shape
    assert Cin == Cin_w and K == K2
    out_dtype = x_nchw.dtype

    # TODO(synk): stride/dilation/groups fixed at Conv2d defaults (1/1/1), as in the module.

    # ---- layout plumbing (plain JAX; NCHW in/out is part of the module contract) ----
    x_nhwc = jnp.transpose(x_nchw, (0, 2, 3, 1))
    xp = jnp.pad(x_nhwc, ((0, 0), (padding, padding), (padding, padding), (0, 0)))
    Hp, Wp = H + 2 * padding, W + 2 * padding
    Hout, Wout = Hp - K + 1, Wp - K + 1
    Kc = K * K * Cin
    M = N * Hout * Wout

    # Output-channel packing: G output pixels share one 128-lane output row.
    if Cout >= _LANES:
        c_sub = _round_up(Cout, _LANES)
        G = 1
    else:
        c_sub = 1 << max((Cout - 1).bit_length(), 0)   # next pow2 -> divides 128
        G = _LANES // c_sub
    NL = G * c_sub                                     # packed lane width (>=128)
    GKc = G * Kc
    GKc_p = _round_up(GKc, _SUB)                       # sublane-align contraction dim only

    # im2col: rows are output pixels, columns are (kh, kw, cin).
    # TODO(synk): for large H*W*Cin, build this tile inside the kernel from a halo'd
    # NHWC block (manual DMA) instead of materialising the K^2-replicated LHS in HBM.
    patches = [xp[:, kh:kh + Hout, kw:kw + Wout, :]
               for kh in range(K) for kw in range(K)]
    lhs = jnp.concatenate(patches, axis=-1).reshape(M, Kc)

    # Fused weight: OIHW -> (kh,kw,cin,cout) -> (Kc, c_sub); block-diagonal kron so one
    # matmul produces G packed output pixels per row.  Bias tiled to the packed lanes.
    w2d = jnp.transpose(weight_oihw, (2, 3, 1, 0)).reshape(Kc, Cout)
    w2d = jnp.pad(w2d, ((0, 0), (0, c_sub - Cout)))
    w_blk = jnp.kron(jnp.eye(G, dtype=w2d.dtype), w2d)             # (GKc, NL)
    w_blk = jnp.pad(w_blk, ((0, GKc_p - GKc), (0, 0))).astype(compute_dtype)
    b_pack = jnp.tile(jnp.pad(bias, (0, c_sub - Cout)), G).reshape(1, NL)
    b_pack = b_pack.astype(jnp.float32)                            # f32 VPU bias add

    # ---- M-tiling: big tiles, VMEM-aware, grid kept >=2 steps (v7x megacore) ----
    P = _cdiv(M, G)                                    # packed output rows
    in_sz = jnp.dtype(compute_dtype).itemsize
    out_sz = jnp.dtype(out_dtype).itemsize
    per_row = 2 * (GKc_p * in_sz + NL * out_sz)        # double-buffered lhs + out rows
    resident = 2 * GKc_p * NL * in_sz + 2 * NL * 4     # weight + bias buffers
    # TODO(synk): if resident weight outgrows VMEM (very large Cin), tile the contraction
    # dim with an accumulator grid axis instead of keeping the weight fully resident.
    tm_cap = max(_SUB, ((_VMEM_TILE_BUDGET - resident) // max(per_row, 1)) // _SUB * _SUB)
    tm_eff = min(tm, tm_cap, _round_up(P, _SUB))
    steps = 4 if P >= 4 * _SUB else (2 if P >= 2 * _SUB else 1)
    if steps > 1:
        tm_eff = min(tm_eff, _round_up(_cdiv(P, steps), _SUB))
    tm_eff = max(tm_eff, _SUB)
    P_pad = _round_up(P, tm_eff)

    # Pad rows, pack G pixels per row (free row-major reshape), pad contraction dim,
    # and cast the matmul operands to the compute dtype (bf16 MXU, f32 accumulate).
    lhs = jnp.pad(lhs, ((0, P_pad * G - M), (0, 0))).reshape(P_pad, GKc)
    lhs = jnp.pad(lhs, ((0, 0), (0, GKc_p - GKc))).astype(compute_dtype)

    grid = (P_pad // tm_eff,)
    out_packed = pl.pallas_call(
        _matmul_bias_kernel,
        out_shape=jax.ShapeDtypeStruct((P_pad, NL), out_dtype),
        grid=grid,
        in_specs=[
            pl.BlockSpec((tm_eff, GKc_p), lambda m: (m, 0)),
            # Constant index_maps keep the fused weight / bias resident across steps.
            # TODO(synk): single-buffer these (pipeline_mode=pl.Buffered(1)) for large
            # channel counts; irrelevant at this weight size.
            pl.BlockSpec((GKc_p, NL), lambda m: (0, 0)),
            pl.BlockSpec((1, NL), lambda m: (0, 0)),
        ],
        out_specs=pl.BlockSpec((tm_eff, NL), lambda m: (m, 0)),
        compiler_params=pltpu.CompilerParams(
            dimension_semantics=("parallel",),
            vmem_limit_bytes=28 * 1024 * 1024,   # under v7x's 32 MiB scoped / 64 MiB phys
        ),
    )(lhs, w_blk, b_pack)

    # Unpack (free reshape), drop padded rows/channels, restore NCHW.
    # TODO(synk): the NCHW<->NHWC transposes are kept only to honour the module's NCHW
    # contract; drop them if the caller can accept NHWC.
    out2d = out_packed.reshape(P_pad * G, c_sub)[:M, :Cout]
    out_nhwc = out2d.reshape(N, Hout, Wout, Cout)
    return jnp.transpose(out_nhwc, (0, 3, 1, 2))


if __name__ == "__main__":
    # Shapes consistent with the module: Conv2d(in=4, out=8, k=3, padding=1)
    N, Cin, H, W = 2, 4, 16, 16
    Cout, K, pad = 8, 3, 1

    key = jax.random.PRNGKey(0)
    kx, kw, kb = jax.random.split(key, 3)

    x = jax.random.normal(kx, (N, Cin, H, W), dtype=jnp.float32)

    # Deterministic init mimicking PyTorch Conv2d default (uniform ±1/sqrt(fan_in))
    fan_in = Cin * K * K
    bound = 1.0 / jnp.sqrt(jnp.float32(fan_in))
    weight = jax.random.uniform(kw, (Cout, Cin, K, K), jnp.float32,
                                minval=-bound, maxval=bound)
    bias = jax.random.uniform(kb, (Cout,), jnp.float32,
                              minval=-bound, maxval=bound)

    out = deformable_conv2d(x, weight, bias, pad)
    out = jax.block_until_ready(out)
    assert out.shape == (N, Cout, H, W), out.shape

    def conv_ref(xv, wv):
        r = jax.lax.conv_general_dilated(
            xv, wv, window_strides=(1, 1), padding=((pad, pad), (pad, pad)),
            dimension_numbers=("NCHW", "OIHW", "NCHW"),
            precision=jax.lax.Precision.HIGHEST)
        return r + bias.reshape(1, Cout, 1, 1)

    # Reference 1: exact model of the kernel's bf16-operand / f32-accumulate path.
    ref_bf16 = conv_ref(x.astype(jnp.bfloat16).astype(jnp.float32),
                        weight.astype(jnp.bfloat16).astype(jnp.float32))
    err_b = float(jnp.max(jnp.abs(out - ref_bf16)))
    assert jnp.allclose(out, ref_bf16, atol=1e-3, rtol=1e-3), err_b

    # Reference 2: full-f32 module output (only bf16 operand rounding differs).
    ref_f32 = conv_ref(x, weight)
    err_f = float(jnp.max(jnp.abs(out - ref_f32)))
    assert jnp.allclose(out, ref_f32, atol=5e-2, rtol=5e-2), err_f

    print("KERNEL_OK")
</pallas_src>

<mosaic_0001>
module attributes {stable_mosaic.version = 11 : i64} {
  func.func @_matmul_bias_kernel(%arg0: i32, %arg1: memref<16x576xbf16, #tpu.memory_space<vmem>>, %arg2: memref<576x128xbf16, #tpu.memory_space<vmem>>, %arg3: memref<1x128xf32, #tpu.memory_space<vmem>>, %arg4: memref<16x128xf32, #tpu.memory_space<vmem>>) attributes {dimension_semantics = [#tpu.dimension_semantics<parallel>], iteration_bounds = array<i64: 2>, scalar_prefetch = 0 : i64, scratch_operands = 0 : i64, tpu.core_type = #tpu.core_type<tc>, window_params = [{transform_indices = @transform_0, window_bounds = array<i64: 16, 576>}, {pipeline_mode = #tpu.pipeline_mode<synchronous>, transform_indices = @transform_1, window_bounds = array<i64: 576, 128>}, {pipeline_mode = #tpu.pipeline_mode<synchronous>, transform_indices = @transform_2, window_bounds = array<i64: 1, 128>}, {transform_indices = @transform_3, window_bounds = array<i64: 16, 128>}]} {
    %c0 = arith.constant 0 : index
    %c0_0 = arith.constant 0 : index
    %0 = vector.load %arg1[%c0, %c0_0] : memref<16x576xbf16, #tpu.memory_space<vmem>>, vector<16x576xbf16>
    %c0_1 = arith.constant 0 : index
    %c0_2 = arith.constant 0 : index
    %1 = vector.load %arg2[%c0_1, %c0_2] : memref<576x128xbf16, #tpu.memory_space<vmem>>, vector<576x128xbf16>
    %cst = arith.constant dense<0.000000e+00> : vector<16x128xf32>
    %2 = tpu.matmul %0, %1, %cst {dimension_numbers = #tpu.dot_dimension_numbers<[1], [0], [0], [1], [0, 0, 1, 1], [], []>} : vector<16x576xbf16>, vector<576x128xbf16>, vector<16x128xf32> -> vector<16x128xf32>
    %c0_3 = arith.constant 0 : index
    %c0_4 = arith.constant 0 : index
    %3 = vector.load %arg3[%c0_3, %c0_4] : memref<1x128xf32, #tpu.memory_space<vmem>>, vector<1x128xf32>
    %4 = vector.broadcast %3 : vector<1x128xf32> to vector<16x128xf32>
    %5 = arith.addf %2, %4 : vector<16x128xf32>
    %c0_5 = arith.constant 0 : index
    %c0_6 = arith.constant 0 : index
    %6 = vector.load %arg4[%c0_5, %c0_6] : memref<16x128xf32, #tpu.memory_space<vmem>>, vector<16x128xf32>
    tpu.vector_store %arg4[%c0_5, %c0_6], %5 {strides = array<i32>} : memref<16x128xf32, #tpu.memory_space<vmem>>, vector<16x128xf32>,
    return
  }
  func.func @transform_0(%arg0: i32) -> (i32, i32) {
    %c0_i32 = arith.constant 0 : i32
    %c0_i32_0 = arith.constant 0 : i32
    return %arg0, %c0_i32 : i32, i32
  }
  func.func @transform_1(%arg0: i32) -> (i32, i32) {
    %c0_i32 = arith.constant 0 : i32
    %c0_i32_0 = arith.constant 0 : i32
    %c0_i32_1 = arith.constant 0 : i32
    return %c0_i32, %c0_i32_0 : i32, i32
  }
  func.func @transform_2(%arg0: i32) -> (i32, i32) {
    %c0_i32 = arith.constant 0 : i32
    %c0_i32_0 = arith.constant 0 : i32
    %c0_i32_1 = arith.constant 0 : i32
    return %c0_i32, %c0_i32_0 : i32, i32
  }
  func.func @transform_3(%arg0: i32) -> (i32, i32) {
    %c0_i32 = arith.constant 0 : i32
    %c0_i32_0 = arith.constant 0 : i32
    return %arg0, %c0_i32 : i32, i32
  }
}

</mosaic_0001>

<bundles_post_ra>
// kernel: tpu_custom_call.1
= control target key start
LH: loop header
LB: loop body
LE: loop exit
PB: predicated region body
PF: predicated region fallthrough
CT: control target
= control target key end

     0   :  { %8 = vsyncpa [#allocation3], 0  ;;  %s1334_s0 = inlined_call_operand.hbm [shape: bf16[32,576], index: 0, kind: input, shape index: {}]   ;;  %s1335_s1 = inlined_call_operand.hbm [shape: bf16[576,128], index: 1, kind: input, shape index: {}]   ;;  %s1336_s2 = inlined_call_operand.vmem [shape: f32[1,128], index: 2, kind: input, shape index: {}]   ;;  %s1337_s3 = inlined_call_operand.hbm [shape: f32[32,128], index: 3, kind: output, shape index: {}]  }
   0x1   :  { %10 = vsyncpa [#allocation3 + $0x1], 0 }
   0x2   :  { %11 = vsyncpa [#allocation6], 0 }
   0x3   :  { %12 = vsyncpa [#allocation4], 0 }
   0x4   :  { %14 = vsyncpa [#allocation4 + $0x1], 0  ;;  %s1146_s12 = smov 0   ;;  %s1148_s13 = smov 0  }
   0x5   :  { %s1150_s14 = smov 0   ;;  %s1152_s15 = smov 0  }
   0x6 LB: > { %s1167_s16 = sadd.s32 4294967295, %s1113_s15   ;;  %s760_s17 = sadd.s32 4294967294, %s1113_s15   ;;  %s1113_s15 = sphi %s1152_s15, %s1359_s15   ;;  %s1109_s14 = sphi %s1150_s14, %s1358_s14   ;;  %s1105_s13 = sphi %s1148_s13, %s1357_s13   ;;  %s1101_s12 = sphi %s1146_s12, %s1356_s12  }
   0x7   : > { %p40_p0 = scmp.ne.s32.totalorder %s1105_s13, %s1101_s12  ;;  %p1338_p1 = scmp.eq.s32.totalorder %s1167_s16, 0 }
   0x8   : > { %p112_p3 = scmp.eq.s32.totalorder %s760_s17, 1  ;;  %p761_p5 = scmp.ge.s32.totalorder %s1113_s15, 1 }
   0x9   : > { %p1176_p4 = por %p1338_p1, %p40_p0  ;;  %p119_p7 = scmp.lt.s32.totalorder %s1113_s15, 3 }
   0xa   : > { %p1181_p6 = por %p112_p3, %p40_p0  ;;  %s1115_s21 = smov [#allocation5]  }
   0xb   : > { %s1342_s18 = scalar_select %p1176_p4, 1, 0 }
   0xc   : > { %s1343_s19 = scalar_select %p1181_p6, 1, 0 }
   0xd   : > { %p1186_p8 = pnand %p761_p5, %p119_p7  ;;  %s131_s22 = sshll.u32 %s1115_s21, 4  ;;  %s132_s22 = int_to_ptr.vmem [resolvable:$true] %s131_s22 }
   0xe   : > { %s1200_s24 = sadd.s32 1, %s1113_s15   ;;  %s27_s25 = sadd.s32 1, %s1109_s14 }
   0xf   : > { %s1344_s20 = scalar_select %p1186_p8, 1, 0 }
  0x10   : > { %p891_p9 = pneg %p1186_p8  ;;  %s24_s26 = ssub.s32 %s1113_s15, %s1200_s24 }
  0x11   : > { %s1002_s27 = scalar_lea.vmem %s132_s22, 4608  ;;  %p1010_p5 = scmp.lt.s32.totalorder %s132_s22, %s132_s22 }
  0x12   : > { %p1195_p11 = pnand %p891_p9, %p1338_p1  ;;  %p1003_p13 = scmp.ne.s32.totalorder %s132_s22, %s1002_s27 }
  0x13   : > { %p1011_p7 = scmp.lt.s32.totalorder %s1002_s27, %s1002_s27 }
  0x14   : > { %p993_p12 = pneg %p1195_p11 }
  0x15   : > { %p1012_p10 = por %p1011_p7, %p1010_p5 }
  0x16   : > { %p1005_p0 = pnand %p1003_p13, %p993_p12 }
  0x18   : > { %p1006_p3 = pneg %p1005_p0 }
  0x1a   : > { %p1013_p2 = pnand %p1012_p10, %p1006_p3 }
  0x1c   : > { %1016 = shalt.err (!%p1013_p2)
}
  0x1d   : > { %s1116_s28 = smov 64   ;;  %s1117_s29 = smov 4  }
  0x1e   : > { %894 = dma.hbm_to_vmem [thread:$0]  (!%p1195_p11), %s1335_s1, 4608, %s132_s22, [#allocation6], %s1116_s28, %s1116_s28, %s1117_s29  }
  0x1f   : > { %p25_p9 = scmp.eq.s32.totalorder %s24_s26, 0  ;;  %p34_p12 = scmp.ne.s32.totalorder %s1109_s14, %s1105_s13 }
  0x20   : > { %p35_p10 = scmp.eq.s32.totalorder %s1113_s15, 0  ;;  %p904_p2 = scmp.lt.s32.totalorder %s1113_s15, 2 }
  0x21   : > { %s1217_s5 = scalar_select %p25_p9, %s1109_s14, %s27_s25  }
  0x22   : > { %p36_p13 = por %p35_p10, %p34_p12  ;;  %p1346_p0 = scmp.eq.s32.totalorder %s1167_s16, 1 }
  0x23   : > { %s148_s7 = sand.u32 1, %s1109_s14   ;;  %s881_s8 = smul.u32 640, %s1113_s15 }
  0x24   : > { %p1221_p3 = por %p1346_p0, %p34_p12  ;;  %s880_s9 = smul.u32 40, %s148_s7 }
  0x25   : > { %s1230_s17 = scalar_lea.hbm %s1334_s0, %s881_s8  ;;  %p1232_p11 = pnand %p904_p2, %p36_p13 }
  0x26   : > { %s1347_s6 = scalar_select %p1221_p3, 1, 0 }
  0x27   : > { %s152_s22 = scalar_lea.vmem [#allocation2], %s880_s9  ;;  %s1238_s25 = scalar_lea.sflag [#allocation3], %s148_s7 }
  0x28   : > { %s160_s23 = sshll.u32 %s152_s22, 4  ;;  %s1017_s26 = scalar_lea.hbm %s1230_s17, 640  ;;  %s1236_s23 = int_to_ptr.vmem [resolvable:$true] %s160_s23 }
  0x29   : > { %p1018_p5 = scmp.ne.s32.totalorder %s1230_s17, %s1017_s26  ;;  %p1019_p7 = pneg %p1232_p11 }
  0x2a   : > { %s1022_s29 = scalar_lea.hbm %s1334_s0, 1280  ;;  %p1023_p10 = scmp.lt.s32.totalorder %s1230_s17, %s1334_s0 }
  0x2b   : > { %p1020_p9 = pnand %p1019_p7, %p1018_p5  ;;  %p1024_p2 = scmp.lt.s32.totalorder %s1022_s29, %s1017_s26 }
  0x2d   : > { %p1021_p12 = pneg %p1020_p9  ;;  %p1025_p13 = por %p1024_p2, %p1023_p10 }
  0x2f   : > { %p1026_p0 = pnand %p1025_p13, %p1021_p12 }
  0x31   : > { %1029 = shalt.err (!%p1026_p0)
}
  0x32   : > { %s1030_s7 = scalar_lea.vmem %s1236_s23, 640  ;;  %s1118_s8 = smov [#allocation2]  }
  0x33   : > { %p1031_p1 = scmp.ne.s32.totalorder %s1236_s23, %s1030_s7  ;;  %s1035_s9 = sshll.u32 %s1118_s8, 4  ;;  %s1036_s9 = int_to_ptr.vmem [resolvable:$false] %s1035_s9 }
  0x34   : > { %s1037_s10 = scalar_lea.vmem %s1036_s9, 1280  ;;  %p1038_p9 = scmp.lt.s32.totalorder %s1236_s23, %s1036_s9 }
  0x35   : > { %p1033_p6 = pnand %p1031_p1, %p1019_p7  ;;  %p1039_p3 = scmp.lt.s32.totalorder %s1037_s10, %s1030_s7 }
  0x37   : > { %p1034_p5 = pneg %p1033_p6  ;;  %p1040_p4 = por %p1039_p3, %p1038_p9 }
  0x39   : > { %p1041_p8 = pnand %p1040_p4, %p1034_p5 }
  0x3b   : > { %1044 = shalt.err (!%p1041_p8)
}
  0x3c   : > { %s1119_s11 = smov 320   ;;  %s1120_s22 = smov 20  }
  0x3d   : > { %898 = dma.hbm_to_vmem [thread:$0]  (!%p1232_p11), %s1230_s17, 640, %s1236_s23, %s1238_s25, %s1119_s11, %s1119_s11, %s1120_s22  }
  0x3e   : > { %p1349_p1 = scmp.ne.s32.totalorder %s1344_s20, 0 }
  0x3f   : > { %s1262_s26 = sand.u32 (!%p1349_p1), 1, %s1105_s13   ;;  %p1350_p4 = scmp.ne.s32.totalorder (!%p1349_p1), %s1342_s18, 0 }
  0x40   : > { %172 = sbr.rel (%p1349_p1) target bundleno = 335 (0x14f), region = 32  ;;  %s175_s28 = scalar_lea.sflag (!%p1349_p1), [#allocation3], %s1262_s26 }
  0x41   : > { %s882_s27 = smul.u32 (!%p1349_p1), 40, %s1262_s26 }
  0x43   : > { %s1266_s29 = scalar_lea.vmem (!%p1349_p1), [#allocation2], %s882_s27 }
  0x45   : > { %1088 = dma.done.wait (%p1350_p4), %s175_s28, 640  }
  0x46   : > { %1090 = vsyncadd (%p1350_p4), %s175_s28, 4294966656  ;;  %p1351_p6 = scmp.eq.s32.totalorder %s1167_s16, 0 }
  0x48   : > { %1092 = dma.done.wait (%p1351_p6), [#allocation6], 4608   ;;  %p1352_p8 = pmov %p1351_p6 }
  0x49   : > { %v948_v0 = vld [vmem:[#allocation5 + $0x78] sm:$0xff]   ;;  %v952_v4 = vld [vmem:[#allocation5 + $0x70] sm:$0xff]   ;;  %v956_v8 = vld [vmem:[#allocation5 + $0x68] sm:$0xff]   ;;  %v1121_v33 = vmov 0.0   ;;  %vm1122_vm0 = vmmov 0   ;;  %vm534_vm1 = vcmask 523264  }
  0x4a   : > { %1094 = vsyncadd (%p1352_p8), [#allocation6], 4294962688  ;;  %v949_v1 = vld [vmem:[#allocation5 + $0x38] sm:$0xff]   ;;  %819 = vmatprep.subr.bf16.mxu0 %v948_v0  ;;  %v953_v5 = vld [vmem:[#allocation5 + $0x30] sm:$0xff]   ;;  %s769_s17 = sshll.u32 %s1262_s26, 4  ;;  %s818_s25 = sshll.u32 %s1167_s16, 8 }
  0x4b   : > { %v950_v2 = vld [vmem:[#allocation5 + $0xf8] sm:$0xff]   ;;  %820 = vmatpush3.bf16.msra.mxu0 %v949_v1  ;;  %v954_v6 = vld [vmem:[#allocation5 + $0xf0] sm:$0xff]   ;;  %v957_v9 = vld [vmem:[#allocation5 + $0x28] sm:$0xff]   ;;  %s204_s21 = scalar_lea.vmem [#allocation7], %s769_s17  ;;  %s1291_s7 = scalar_lea.hbm %s1337_s3, %s818_s25 }
  0x4c   : > { %v951_v3 = vld [vmem:[#allocation5 + $0xb8] sm:$0xff]   ;;  %841 = vmatprep.subr.bf16.mxu1 %v950_v2  ;;  %821 = vmatprep.subr.bf16.mxu0 %v952_v4  ;;  %v955_v7 = vld [vmem:[#allocation5 + $0xb0] sm:$0xff]   ;;  %v958_v10 = vld [vmem:[#allocation5 + $0xe8] sm:$0xff]   ;;  %s677_s23 = sshll.u32 %s204_s21, 4  ;;  %s664_s8 = scalar_lea.sflag [#allocation4], %s1262_s26  ;;  %s1286_s23 = int_to_ptr.vmem [resolvable:$true] %s677_s23 }
  0x4d   : > { %842 = vmatpush3.bf16.msra.mxu1 %v951_v3  ;;  %v959_v11 = vld [vmem:[#allocation5 + $0xa8] sm:$0xff]   ;;  %v960_v12 = vld [vmem:[#allocation5 + $0x60] sm:$0xff]   ;;  %v964_v16 = vld [vmem:[#allocation5 + $0x58] sm:$0xff]   ;;  %s1045_s9 = scalar_lea.vmem %s1286_s23, 256  ;;  %p1353_p11 = scmp.ne.s32.totalorder %s1347_s6, 0 }
  0x4e   : > { %843 = vmatprep.subr.bf16.mxu1 %v954_v6  ;;  %v961_v13 = vld [vmem:[#allocation5 + $0x20] sm:$0xff]   ;;  %v965_v17 = vld [vmem:[#allocation5 + $0x18] sm:$0xff]   ;;  %v968_v20 = vld [vmem:[#allocation5 + $0x50] sm:$0xff]   ;;  %p1046_p3 = scmp.ne.s32.totalorder %s1286_s23, %s1045_s9  ;;  %s1123_s16 = smov [#allocation7]  }
  0x4f   : > { %822 = vmatpush3.bf16.msra.mxu0 %v953_v5  ;;  %v962_v14 = vld [vmem:[#allocation5 + $0xe0] sm:$0xff]   ;;  %v966_v18 = vld [vmem:[#allocation5 + $0xd8] sm:$0xff]   ;;  %v969_v21 = vld [vmem:[#allocation5 + $0x10] sm:$0xff]   ;;  %s1049_s10 = sshll.u32 %s1123_s16, 4  ;;  %s1050_s10 = int_to_ptr.vmem [resolvable:$false] %s1049_s10 }
  0x50   : > { %823 = vmatprep.subr.bf16.mxu0 %v956_v8  ;;  %v963_v15 = vld [vmem:[#allocation5 + $0xa0] sm:$0xff]   ;;  %v967_v19 = vld [vmem:[#allocation5 + $0x98] sm:$0xff]   ;;  %v970_v22 = vld [vmem:[#allocation5 + $0xd0] sm:$0xff]   ;;  %p1047_p7 = pnand %p1046_p3, %p1353_p11  ;;  %s1051_s11 = scalar_lea.vmem %s1050_s10, 512 }
  0x51   : > { %844 = vmatpush3.bf16.msra.mxu1 %v955_v7  ;;  %v971_v23 = vld [vmem:[#allocation5 + $0x90] sm:$0xff]   ;;  %v972_v24 = vld [vmem:[#allocation5 + $0x48] sm:$0xff]   ;;  %v976_v28 = vld [vmem:[#allocation5 + $0x40] sm:$0xff]   ;;  %p1052_p10 = scmp.lt.s32.totalorder %s1286_s23, %s1050_s10  ;;  %p1053_p2 = scmp.lt.s32.totalorder %s1051_s11, %s1045_s9 }
  0x52   : > { %845 = vmatprep.subr.bf16.mxu1 %v958_v10  ;;  %v973_v25 = vld [vmem:[#allocation5 + $0x8] sm:$0xff]   ;;  %v977_v29 = vld [vmem:[#allocation5] sm:$0xff]   ;;  %v986_v37 = vld [vmem:[#allocation5 + $0x118] sm:$0xff]   ;;  %p1048_p12 = pneg %p1047_p7 }
  0x53   : > { %824 = vmatpush3.bf16.msra.mxu0 %v957_v9  ;;  %v974_v26 = vld [vmem:[#allocation5 + $0xc8] sm:$0xff]   ;;  %v978_v30 = vld [vmem:[#allocation5 + $0xc0] sm:$0xff]   ;;  %v987_v38 = vld [vmem:[#allocation5 + $0x110] sm:$0xff]   ;;  %p1054_p13 = por %p1053_p2, %p1052_p10 }
  0x54   : > { %825 = vmatprep.subr.bf16.mxu0 %v960_v12  ;;  %v975_v27 = vld [vmem:[#allocation5 + $0x88] sm:$0xff]   ;;  %v982_v34 = vld [vmem:[#allocation5 + $0x80] sm:$0xff]   ;;  %v770_v48 = vld [vmem:[%s1336_s2] ss:$0 sm:$0xff] }
  0x55   : > { %846 = vmatpush3.bf16.msra.mxu1 %v959_v11  ;;  %v979_v31 = vld [vmem:[%s1266_s29] ss:$20 sps:$4 sm:$0xff]   ;;  %v981_v32 = vld [vmem:[%s1266_s29 + $0x4] ss:$20 sps:$4 sm:$0xff]   ;;  %v983_v35 = vld [vmem:[%s1266_s29 + $0x8] ss:$20 sps:$4 sm:$0xff]   ;;  %p1055_p0 = pnand %p1054_p13, %p1048_p12 }
  0x56   : > { %847 = vmatprep.subr.bf16.mxu1 %v962_v14  ;;  %570 = vmatprep.mubr.bf16.mxu0 %v981_v32  ;;  %v985_v36 = vld [vmem:[%s1266_s29 + $0xc] ss:$20 sps:$4 sm:$0xff]   ;;  %v988_v39 = vld [vmem:[#allocation5 + $0x108] sm:$0xff]  }
  0x57   : > { %826 = vmatpush3.bf16.msra.mxu0 %v961_v13  ;;  %611 = vmatprep.mubr.bf16.mxu1 %v985_v36  ;;  %v989_v40 = vld [vmem:[#allocation5 + $0x100] sm:$0xff]  }
  0x58   : > { %827 = vmatprep.subr.bf16.mxu0 %v964_v16  ;;  %v990_v41 = vld [vmem:[%s1266_s29 + $0x10] ss:$20 sps:$4 sm:$0xff]  }
  0x59   : > { %848 = vmatpush3.bf16.msra.mxu1 %v963_v15 }
  0x5a   : > { %849 = vmatprep.subr.bf16.mxu1 %v966_v18 }
  0x5b   : > { %828 = vmatpush3.bf16.msra.mxu0 %v965_v17 }
  0x5c   : > { %829 = vmatprep.subr.bf16.mxu0 %v968_v20 }
  0x5d   : > { %850 = vmatpush3.bf16.msra.mxu1 %v967_v19 }
  0x5e   : > { %851 = vmatprep.subr.bf16.mxu1 %v970_v22 }
  0x5f   : > { %830 = vmatpush3.bf16.msra.mxu0 %v969_v21 }
  0x60   : > { %831 = vmatprep.subr.bf16.mxu0 %v972_v24 }
  0x61   : > { %852 = vmatpush3.bf16.msra.mxu1 %v971_v23 }
  0x62   : > { %853 = vmatprep.subr.bf16.mxu1 %v974_v26 }
  0x63   : > { %832 = vmatpush3.bf16.msra.mxu0 %v973_v25 }
  0x64   : > { %833 = vmatprep.subr.bf16.mxu0 %v976_v28 }
  0x65   : > { %854 = vmatpush3.bf16.msra.mxu1 %v975_v27 }
  0x66   : > { %855 = vmatprep.subr.bf16.mxu1 %v978_v30 }
  0x67   : > { %834 = vmatpush3.bf16.msra.mxu0 %v977_v29 }
  0x68   : > { %868 = vmatprep.subr.bf16.mxu0 %v1121_v33 }
  0x69   : > { %856 = vmatpush3.bf16.msra.mxu1 %v982_v34 }
  0x6a   : > { %571 = vmatmul.mubr.bf16.vlgmr.msra.gmra.mxu0 %v979_v31 }
  0x6b   : > { %876 = vmatprep.mubr.msk.bf16.mxu0 %vm1122_vm0, %v1121_v33  ;;  %869 = vmatpush3.bf16.msra.mxu0 %v986_v37 }
  0x6c   : > { %612 = vmatmul.mubr.bf16.vlgmr.msra.gmra.mxu1 %v983_v35  ;;  %870 = vmatprep.subr.bf16.mxu0 %v1121_v33 }
  0x6f   : > { %871 = vmatpush3.bf16.msra.mxu0 %v987_v38 }
  0x70   : > { %872 = vmatprep.subr.bf16.mxu0 %v1121_v33 }
  0x73   : > { %873 = vmatpush3.bf16.msra.mxu0 %v988_v39 }
  0x74   : > { %874 = vmatprep.subr.bf16.mxu0 %v1121_v33 }
  0x77   : > { %875 = vmatpush3.bf16.msra.mxu0 %v989_v40 }
  0x7a   : > { %877 = vmatmul.mubr.msk.bf16.vlgmr.msra.gmra.mxu0 %vm534_vm1, %v990_v41 }
 0x12a   : > { %v835_v42 = vpop.f32.mrf.mxu0 }
 0x12c   : > { %v836_v43 = vpop.f32.mrf.mxu0  ;;  %v857_v44 = vpop.f32.mrf.mxu1 }
 0x12d   : > { %v837_v47 = vadd.f32 %v836_v43, %v835_v42 }
 0x12e   : > { %v838_v45 = vpop.f32.mrf.mxu0  ;;  %v858_v46 = vpop.f32.mrf.mxu1 }
 0x12f   : > { %v573_v51 = vadd.f32 %v837_v47, %v770_v48  ;;  %v859_v52 = vadd.f32 %v858_v46, %v857_v44 }
 0x130   : > { %v839_v49 = vpop.f32.mrf.mxu0  ;;  %v860_v50 = vpop.f32.mrf.mxu1 }
 0x131   : > { %v840_v53 = vadd.f32 %v839_v49, %v838_v45  ;;  %v614_v57 = vadd.f32 %v859_v52, %v573_v51 }
 0x132   : > { %v861_v54 = vpop.f32.mrf.mxu1 }
 0x133   : > { %v576_v55 = vadd.f32 %v840_v53, %v770_v48  ;;  %v862_v56 = vadd.f32 %v861_v54, %v860_v50 }
 0x135   : > { %v617_v61 = vadd.f32 %v862_v56, %v576_v55 }
 0x13a   : > { %v654_v58 = vpop.f32.mrf.mxu0 }
 0x13b   : > { %v655_v59 = vadd.f32 %v654_v58, %v614_v57 }
 0x13c   : > { %v878_v60 = vpop.f32.mrf.mxu0 }
 0x13d   : > { %661 = vst [vmem:[%s204_s21] sm:$0xff] %v655_v59 }
 0x13e   : > { %v657_v62 = vpop.f32.mrf.mxu0 }
 0x13f   : > { %v658_v63 = vadd.f32 %v657_v62, %v617_v61 }
 0x140   : > { %v879_v0 = vpop.f32.mrf.mxu0 }
 0x141   : > { %662 = vst [vmem:[%s204_s21 + $0x8] sm:$0xff] %v658_v63 }
 0x142   : > { %1058 = shalt.err (!%p1055_p0)
}
 0x143   : > { %s1059_s22 = scalar_lea.hbm %s1291_s7, 256  ;;  %s1063_s29 = scalar_lea.hbm %s1337_s3, 512 }
 0x144   : > { %p1060_p5 = scmp.ne.s32.totalorder %s1291_s7, %s1059_s22  ;;  %p1064_p4 = scmp.lt.s32.totalorder %s1291_s7, %s1337_s3 }
 0x145   : > { %p1065_p6 = scmp.lt.s32.totalorder %s1063_s29, %s1059_s22 }
 0x146   : > { %p1061_p9 = pnand %p1060_p5, %p1353_p11 }
 0x147   : > { %p1066_p8 = por %p1065_p6, %p1064_p4 }
 0x148   : > { %p1062_p1 = pneg %p1061_p9 }
 0x14a   : > { %p1067_p3 = pnand %p1066_p8, %p1062_p1 }
 0x14c   : > { %1070 = shalt.err (!%p1067_p3)
}
 0x14d   : > { %s1124_s17 = smov 128   ;;  %s1125_s21 = smov 8  }
 0x14e   : > { %889 = dma.vmem_to_hbm [thread:$0]  (%p1353_p11), %s1286_s23, 256, %s1291_s7, %s664_s8, %s1124_s17, %s1124_s17, %s1125_s21  }
 0x14f PF: > { %s692_s25 = sand.u32 1, %s1101_s12   ;;  %p1354_p7 = scmp.ne.s32.totalorder %s1343_s19, 0 }
 0x150   : > { %p1355_p12 = scmp.ge.s32.totalorder %s1113_s15, 2  ;;  %s693_s30 = scalar_lea.sflag [#allocation4], %s692_s25 }
 0x152   : > { %p900_p10 = pnand %p1355_p12, %p1354_p7 }
 0x154   : > { %p901_p2 = pneg %p900_p10 }
 0x156   : > { %1096 = dma.done.wait (%p901_p2), %s693_s30, 256  }
 0x157   : > { %1098 = vsyncadd (%p901_p2), %s693_s30, 4294967040  ;;  %p17_p13 = scmp.ge.s32.totalorder %s1200_s24, 4   ;;  %s1356_s12 = smov %s1105_s13 }
 0x158   : > { %s1357_s13 = smov %s1109_s14  ;;  %s1358_s14 = smov %s1217_s5 }
 0x159   : > { %s1359_s15 = smov %s1200_s24  ;;  %19 = sbr.rel (!%p17_p13) target bundleno = 6 (0x6), region = 81 }
 0x15e   :  { %698 = vsyncpa [#allocation3], 1 }
 0x15f   :  { %700 = vsyncpa [#allocation3 + $0x1], 1 }
 0x160   :  { %701 = vsyncpa [#allocation6], 1 }
 0x161   :  { %702 = vsyncpa [#allocation4], 1 }
 0x162   :  { %704 = vsyncpa [#allocation4 + $0x1], 1 }

</bundles_post_ra>
